<compile_context>
chip_gen: v6e
topology: v6e:2x2x1
jax: 0.10.0
libtpu: 0.0.40
codegen_flags: <defaults>
</compile_context>

<pallas_src>
import functools

import numpy as np

import jax
import jax.numpy as jnp
from jax.experimental import pallas as pl
from jax.experimental.pallas import tpu as pltpu


_STATE_ROWS = 8  # fused per-shard slab: rows 0..3 = match / pred / label / jacc
_ROW_MATCH, _ROW_PRED, _ROW_LABEL, _ROW_JACC = 0, 1, 2, 3


def _round_up(x, m):
    return ((x + m - 1) // m) * m


def _cdiv(a, b):
    return -(-a // b)


def init_state(num_classes):
    """Running device state: rows 0..2 = match/pred/label sums, row 3 = run_jacc."""
    return jnp.zeros((_STATE_ROWS, num_classes), jnp.float32)


def _pick_tile(b, c, itemsize, tb_max=512, vmem_budget_bytes=16 * 1024 * 1024):
    # Per batch row: 2 streamed inputs x 2 pipeline buffers at native dtype,
    # plus ~5 f32 tile-sized intermediates materialized inside the body.
    # 512-row tiles already sit at ~85% of the HBM roofline, so cap there.
    bytes_per_row = (4 * itemsize + 5 * 4) * c
    tb = vmem_budget_bytes // max(bytes_per_row, 1)
    tb = max(32, min(tb_max, (tb // 32) * 32))
    return min(tb, _round_up(b, 32))


def _fold_rows(x, g):
    """Sum (g*8, ...) rows in groups of 8 -> (8, ...): full-vreg adds, no XLU."""
    out = x[0:8]
    for j in range(1, g):
        out = out + x[j * 8:(j + 1) * 8]
    return out


def _make_metrics_kernel(b, c, tb, sps, n_blocks, binary_inputs):
    ragged = (n_blocks * tb != b)  # static: some tile contains rows >= b
    g = tb // 8

    def kernel(p_ref, l_ref, out_ref, match_acc, pred_acc, label_acc, jacc_acc):
        s = pl.program_id(0)   # shard (parallel across TensorCores on v7x)
        i = pl.program_id(1)   # batch tile within the shard

        @pl.when(i == 0)
        def _init():
            match_acc[...] = jnp.zeros_like(match_acc)
            pred_acc[...] = jnp.zeros_like(pred_acc)
            label_acc[...] = jnp.zeros_like(label_acc)
            jacc_acc[...] = jnp.zeros_like(jacc_acc)

        p = p_ref[...].astype(jnp.float32)   # (tb, c)
        l = l_ref[...].astype(jnp.float32)

        if ragged:
            # Zero out rows beyond the true batch (garbage from the partial /
            # clamped final tile) before any reduction touches them.
            row0 = (s * sps + i) * tb
            rid = row0 + jax.lax.broadcasted_iota(jnp.int32, (tb, 1), 0)
            valid = rid < b
            p = jnp.where(valid, p, 0.0)
            l = jnp.where(valid, l, 0.0)

        m = p * l

        # Sublane-preserving partial sums into VMEM scratch (collapsed once at
        # the end of the shard).
        match_acc[...] += _fold_rows(m, g)
        pred_acc[...] += _fold_rows(p, g)
        label_acc[...] += _fold_rows(l, g)

        # Per-row Jaccard.  |A∪B| = |A| + |B| - |A∩B|.
        if binary_inputs:
            # Multi-hot {0,1}: AND == p*l, counts reuse m / p+l directly.
            and_row = jnp.sum(m, axis=1, keepdims=True)                  # (tb,1)
            or_row = jnp.sum(p + l, axis=1, keepdims=True) - and_row
        else:
            # Torch truthiness (nonzero == True) for arbitrary floats.
            p_b = (p != 0.0).astype(jnp.float32)
            l_b = (l != 0.0).astype(jnp.float32)
            and_row = jnp.sum(p_b * l_b, axis=1, keepdims=True)
            or_row = jnp.sum(p_b + l_b, axis=1, keepdims=True) - and_row
        # Rows with an empty union give 0/0 = NaN, matching torch semantics.
        jacc_row = and_row * pl.reciprocal(or_row, approx=False)
        if ragged:
            jacc_row = jnp.where(valid, jacc_row, 0.0)   # drop padded rows
        jacc_acc[...] += _fold_rows(jacc_row, g)

        @pl.when(i == sps - 1)
        def _finalize():
            out_ref[...] = jnp.zeros_like(out_ref)
            out_ref[_ROW_MATCH, :] = jnp.sum(match_acc[...], axis=0)
            out_ref[_ROW_PRED, :] = jnp.sum(pred_acc[...], axis=0)
            out_ref[_ROW_LABEL, :] = jnp.sum(label_acc[...], axis=0)
            out_ref[_ROW_JACC, :] = (jnp.zeros((c,), jnp.float32)
                                     + jnp.sum(jacc_acc[...]))

    return kernel


@functools.partial(jax.jit, static_argnames=("tb", "nshard", "binary_inputs"))
def multilabel_metrics_update(state, predictions, labels, *, tb=None, nshard=2,
                              binary_inputs=True):
    """One forward() step: returns the updated (8, C) state slab (stays on device)."""
    b, c = predictions.shape
    assert labels.shape == (b, c)
    itemsize = jnp.dtype(predictions.dtype).itemsize

    if tb is None:
        tb_eff = _pick_tile(b, c, itemsize)
    else:
        # NOTE: for sub-32-bit input dtypes pass tb as a multiple of 32.
        tb_eff = min(max(8, (tb // 8) * 8), _round_up(b, 8))

    n_tiles = _cdiv(b, tb_eff)
    nshard_eff = max(1, min(nshard, n_tiles))
    sps = _cdiv(n_tiles, nshard_eff)          # batch tiles per shard
    n_blocks = nshard_eff * sps

    if n_blocks > n_tiles:
        # Extra (fully out-of-range) tiles re-read the last valid block and are
        # fully masked in-kernel via the unclamped row index.
        def row_block(s, i):
            return jnp.minimum(s * sps + i, n_tiles - 1)
    else:
        def row_block(s, i):
            return s * sps + i

    def in_map(s, i):
        return (row_block(s, i), 0)

    kernel = _make_metrics_kernel(b, c, tb_eff, sps, n_blocks, binary_inputs)

    cost = pl.CostEstimate(
        flops=(7 if binary_inputs else 11) * b * c,
        transcendentals=0,
        bytes_accessed=2 * b * c * itemsize + nshard_eff * _STATE_ROWS * c * 4,
    )

    partials = pl.pallas_call(
        kernel,
        out_shape=jax.ShapeDtypeStruct((nshard_eff, _STATE_ROWS, c), jnp.float32),
        grid_spec=pltpu.PrefetchScalarGridSpec(
            num_scalar_prefetch=0,
            grid=(nshard_eff, sps),
            in_specs=[
                pl.BlockSpec((tb_eff, c), in_map),   # predictions (native dtype)
                pl.BlockSpec((tb_eff, c), in_map),   # labels      (native dtype)
            ],
            out_specs=pl.BlockSpec((None, _STATE_ROWS, c), lambda s, i: (s, 0, 0)),
            scratch_shapes=[
                pltpu.VMEM((_STATE_ROWS, c), jnp.float32),   # match partials
                pltpu.VMEM((_STATE_ROWS, c), jnp.float32),   # pred partials
                pltpu.VMEM((_STATE_ROWS, c), jnp.float32),   # label partials
                pltpu.VMEM((_STATE_ROWS, 1), jnp.float32),   # jacc partials
            ],
        ),
        compiler_params=pltpu.CompilerParams(
            dimension_semantics=("parallel", "arbitrary"),
            vmem_limit_bytes=32 * 1024 * 1024,
        ),
        cost_estimate=cost,
    )(predictions, labels)

    # Tiny (nshard, 8, C) combine fused into the same jit; no host readback.
    return state + jnp.sum(partials, axis=0)


class MultiLabelMetrics:
    """Stateful wrapper mirroring the PyTorch module; hot path runs in Pallas.

    `binary_inputs=True` (default) assumes multi-hot {0,1} predictions/labels
    (exact, faster Jaccard); set False for torch's nonzero-truthiness semantics
    on arbitrary-float inputs.  forward() performs no host sync; state lives on
    device until calculate_metrics() (single device_get).
    """

    def __init__(self, num_classes, loss=True, tb=None, nshard=2, binary_inputs=True):
        self.num_classes = num_classes
        self._tb = tb
        self._nshard = nshard
        self._binary_inputs = binary_inputs
        self._state = init_state(num_classes)
        self.counter = 0
        self._has_loss = loss
        if loss:
            self.run_loss = 0.0

    def forward(self, predictions, labels, loss=None):
        self._state = multilabel_metrics_update(
            self._state, predictions, labels,
            tb=self._tb, nshard=self._nshard, binary_inputs=self._binary_inputs)
        self.counter += 1
        if loss is not None:
            self.run_loss += loss
        return self

    __call__ = forward

    # Read-only views onto the device state (host sync only when read).
    @property
    def match(self):
        return self._state[_ROW_MATCH, :self.num_classes]

    @property
    def predictions(self):
        return self._state[_ROW_PRED, :self.num_classes]

    @property
    def labels(self):
        return self._state[_ROW_LABEL, :self.num_classes]

    @property
    def run_jacc(self):
        return float(self._state[_ROW_JACC, 0])

    def refresh(self):
        self._state = jnp.zeros_like(self._state)
        self.counter = 0
        if self._has_loss:
            self.run_loss = 0.0
        return self

    def calculate_metrics(self, refresh=True):
        state = np.asarray(jax.device_get(self._state))  # single host sync
        match = state[_ROW_MATCH, :self.num_classes]
        preds = state[_ROW_PRED, :self.num_classes]
        labels = state[_ROW_LABEL, :self.num_classes]
        run_jacc = float(state[_ROW_JACC, 0])

        with np.errstate(divide="ignore", invalid="ignore"):
            prec = match / preds
            rec = match / labels
        prec = np.where(np.isnan(prec), 0.0, prec)
        rec = np.where(np.isnan(rec), 0.0, rec)
        with np.errstate(divide="ignore", invalid="ignore"):
            f1 = 2 * prec * rec / (prec + rec)
        f1 = np.where(np.isnan(f1), 0.0, f1)

        self.macro_prec = float(prec.mean())
        self.macro_rec = float(rec.mean())
        self.macro_f1 = float(f1.mean())

        match_total = float(match.sum())
        preds_total = float(preds.sum())
        labels_total = float(labels.sum())
        self.micro_prec = match_total / preds_total if preds_total > 0 else 0.0
        self.micro_rec = match_total / labels_total
        s = self.micro_prec + self.micro_rec
        self.micro_f1 = 0.0 if s == 0 else 2 * self.micro_prec * self.micro_rec / s
        self.jacc = run_jacc / self.counter
        if self._has_loss:
            self.loss = self.run_loss / self.counter
        if refresh:
            self.refresh()
        return self


if __name__ == "__main__":
    key = jax.random.PRNGKey(0)
    k1, k2, k3, k4, k5, k6 = jax.random.split(key, 6)

    def ref_step(p, l):
        m = jnp.sum(p * l, axis=0)
        ps = jnp.sum(p, axis=0)
        ls = jnp.sum(l, axis=0)
        pb, lb = p != 0, l != 0
        j = jnp.sum(jnp.sum(jnp.logical_and(pb, lb), axis=1).astype(jnp.float32)
                    / jnp.sum(jnp.logical_or(pb, lb), axis=1).astype(jnp.float32))
        return m, ps, ls, j

    # ---- test 1: small batch, torch-truthiness path ---------------------------
    C = 32
    B = 8
    preds = jax.random.bernoulli(k1, 0.4, (B, C)).astype(jnp.float32)
    labels = jax.random.bernoulli(k2, 0.3, (B, C)).astype(jnp.float32)
    labels = labels.at[:, 0].set(1.0)  # every row has a nonzero union (no 0/0)

    metrics = MultiLabelMetrics(C, binary_inputs=False)
    metrics.forward(preds, labels, loss=0.5)
    jax.block_until_ready(metrics._state)

    rm, rp, rl, rj = ref_step(preds, labels)
    assert jnp.allclose(metrics.match, rm), "match sum mismatch"
    assert jnp.allclose(metrics.predictions, rp), "prediction sum mismatch"
    assert jnp.allclose(metrics.labels, rl), "label sum mismatch"
    assert abs(metrics.run_jacc - float(rj)) <= 1e-5 * max(1.0, float(rj)), "jaccard mismatch"
    metrics.calculate_metrics(refresh=False)

    # ---- test 2: multi-tile grid, ragged batch, two accumulation steps --------
    B2 = 20  # tb=8 -> 3 tiles, 2 shards -> shard 1 has one clamped/masked tile
    m2 = MultiLabelMetrics(C, tb=8, nshard=2)  # binary fast path (default)
    p_a = jax.random.bernoulli(k3, 0.5, (B2, C)).astype(jnp.float32)
    l_a = jax.random.bernoulli(k4, 0.3, (B2, C)).astype(jnp.float32)
    l_a = l_a.at[:, 1].set(1.0)
    p_b = jnp.roll(p_a, 3, axis=0)
    l_b = jnp.roll(l_a, 5, axis=0)
    m2.forward(p_a, l_a)
    m2.forward(p_b, l_b)
    jax.block_until_ready(m2._state)

    rm1, rp1, rl1, rj1 = ref_step(p_a, l_a)
    rm2, rp2, rl2, rj2 = ref_step(p_b, l_b)
    assert jnp.allclose(m2.match, rm1 + rm2), "multi-step match mismatch"
    assert jnp.allclose(m2.predictions, rp1 + rp2), "multi-step prediction mismatch"
    assert jnp.allclose(m2.labels, rl1 + rl2), "multi-step label mismatch"
    ref_j_tot = float(rj1 + rj2)
    assert abs(m2.run_jacc - ref_j_tot) <= 1e-4 * max(1.0, ref_j_tot), "multi-step jaccard mismatch"
    m2.calculate_metrics()

    # ---- test 3: non-128-multiple class count + multi-tile shards -------------
    B3, C3 = 100, 140
    m3 = MultiLabelMetrics(C3, tb=16, nshard=2)
    p_c = jax.random.bernoulli(k5, 0.35, (B3, C3)).astype(jnp.float32)
    l_c = jax.random.bernoulli(k6, 0.25, (B3, C3)).astype(jnp.float32)
    l_c = l_c.at[:, 0].set(1.0)
    m3.forward(p_c, l_c)
    jax.block_until_ready(m3._state)

    rm3, rp3, rl3, rj3 = ref_step(p_c, l_c)
    assert jnp.allclose(m3.match, rm3), "ragged match mismatch"
    assert jnp.allclose(m3.predictions, rp3), "ragged prediction mismatch"
    assert jnp.allclose(m3.labels, rl3), "ragged label mismatch"
    assert abs(m3.run_jacc - float(rj3)) <= 1e-4 * max(1.0, float(rj3)), "ragged jaccard mismatch"
    m3.calculate_metrics()

    print("KERNEL_OK")
</pallas_src>

<mosaic_0001>
module attributes {stable_mosaic.version = 11 : i64} {
  func.func @kernel(%arg0: i32, %arg1: i32, %arg2: memref<32x32xf32, #tpu.memory_space<vmem>>, %arg3: memref<32x32xf32, #tpu.memory_space<vmem>>, %arg4: memref<1x8x32xf32, #tpu.memory_space<vmem>>, %arg5: memref<8x32xf32, #tpu.memory_space<vmem>>, %arg6: memref<8x32xf32, #tpu.memory_space<vmem>>, %arg7: memref<8x32xf32, #tpu.memory_space<vmem>>, %arg8: memref<8x1xf32, #tpu.memory_space<vmem>>) attributes {dimension_semantics = [#tpu.dimension_semantics<parallel>, #tpu.dimension_semantics<arbitrary>], iteration_bounds = array<i64: 1, 1>, scalar_prefetch = 0 : i64, scratch_operands = 4 : i64, tpu.core_type = #tpu.core_type<tc>, window_params = [{transform_indices = @transform_0, window_bounds = array<i64: 32, 32>}, {transform_indices = @transform_1, window_bounds = array<i64: 32, 32>}, {transform_indices = @transform_2, window_bounds = array<i64: 1, 8, 32>}]} {
    %c0_i32 = arith.constant 0 : i32
    %0 = arith.cmpi eq, %arg1, %c0_i32 : i32
    %1 = arith.extui %0 : i1 to i32
    %c0_i32_0 = arith.constant 0 : i32
    %2 = arith.cmpi ne, %1, %c0_i32_0 : i32
    scf.if %2 {
      %cst_28 = arith.constant 0.000000e+00 : f32
      %84 = vector.broadcast %cst_28 : f32 to vector<8x32xf32>
      %c0_29 = arith.constant 0 : index
      %c0_30 = arith.constant 0 : index
      %85 = vector.load %arg5[%c0_29, %c0_30] : memref<8x32xf32, #tpu.memory_space<vmem>>, vector<8x32xf32>
      tpu.vector_store %arg5[%c0_29, %c0_30], %84 {strides = array<i32>} : memref<8x32xf32, #tpu.memory_space<vmem>>, vector<8x32xf32>,
      %cst_31 = arith.constant 0.000000e+00 : f32
      %86 = vector.broadcast %cst_31 : f32 to vector<8x32xf32>
      %c0_32 = arith.constant 0 : index
      %c0_33 = arith.constant 0 : index
      %87 = vector.load %arg6[%c0_32, %c0_33] : memref<8x32xf32, #tpu.memory_space<vmem>>, vector<8x32xf32>
      tpu.vector_store %arg6[%c0_32, %c0_33], %86 {strides = array<i32>} : memref<8x32xf32, #tpu.memory_space<vmem>>, vector<8x32xf32>,
      %cst_34 = arith.constant 0.000000e+00 : f32
      %88 = vector.broadcast %cst_34 : f32 to vector<8x32xf32>
      %c0_35 = arith.constant 0 : index
      %c0_36 = arith.constant 0 : index
      %89 = vector.load %arg7[%c0_35, %c0_36] : memref<8x32xf32, #tpu.memory_space<vmem>>, vector<8x32xf32>
      tpu.vector_store %arg7[%c0_35, %c0_36], %88 {strides = array<i32>} : memref<8x32xf32, #tpu.memory_space<vmem>>, vector<8x32xf32>,
      %cst_37 = arith.constant 0.000000e+00 : f32
      %90 = vector.broadcast %cst_37 : f32 to vector<8x1xf32>
      %c0_38 = arith.constant 0 : index
      %c0_39 = arith.constant 0 : index
      %91 = vector.load %arg8[%c0_38, %c0_39] : memref<8x1xf32, #tpu.memory_space<vmem>>, vector<8x1xf32>
      tpu.vector_store %arg8[%c0_38, %c0_39], %90 {strides = array<i32>} : memref<8x1xf32, #tpu.memory_space<vmem>>, vector<8x1xf32>,
    } else {
    }
    %c0 = arith.constant 0 : index
    %c0_1 = arith.constant 0 : index
    %3 = vector.load %arg2[%c0, %c0_1] : memref<32x32xf32, #tpu.memory_space<vmem>>, vector<32x32xf32>
    %c0_2 = arith.constant 0 : index
    %c0_3 = arith.constant 0 : index
    %4 = vector.load %arg3[%c0_2, %c0_3] : memref<32x32xf32, #tpu.memory_space<vmem>>, vector<32x32xf32>
    %c1_i32 = arith.constant 1 : i32
    %5 = arith.muli %arg0, %c1_i32 : i32
    %6 = arith.addi %5, %arg1 : i32
    %c32_i32 = arith.constant 32 : i32
    %7 = arith.muli %6, %c32_i32 : i32
    %8 = tpu.iota {dimensions = array<i32: 0>} : vector<32x1xi32>
    %9 = vector.broadcast %7 : i32 to vector<32x1xi32>
    %10 = arith.addi %9, %8 : vector<32x1xi32>
    %c8_i32 = arith.constant 8 : i32
    %11 = vector.broadcast %c8_i32 : i32 to vector<32x1xi32>
    %12 = arith.cmpi slt, %10, %11 : vector<32x1xi32>
    %cst = arith.constant 0.000000e+00 : f32
    %13 = vector.shape_cast %12 : vector<32x1xi1> to vector<32x1xi1>
    %14 = vector.broadcast %13 : vector<32x1xi1> to vector<32x32xi1>
    %15 = vector.broadcast %cst : f32 to vector<32x32xf32>
    %16 = arith.select %14, %3, %15 : vector<32x32xi1>, vector<32x32xf32>
    %cst_4 = arith.constant 0.000000e+00 : f32
    %17 = vector.shape_cast %12 : vector<32x1xi1> to vector<32x1xi1>
    %18 = vector.broadcast %17 : vector<32x1xi1> to vector<32x32xi1>
    %19 = vector.broadcast %cst_4 : f32 to vector<32x32xf32>
    %20 = arith.select %18, %4, %19 : vector<32x32xi1>, vector<32x32xf32>
    %21 = arith.mulf %16, %20 : vector<32x32xf32>
    %c0_5 = arith.constant 0 : index
    %c0_6 = arith.constant 0 : index
    %22 = vector.load %arg5[%c0_5, %c0_6] : memref<8x32xf32, #tpu.memory_space<vmem>>, vector<8x32xf32>
    %23 = vector.extract_strided_slice %21 {offsets = [0, 0], sizes = [8, 32], strides = [1, 1]} : vector<32x32xf32> to vector<8x32xf32>
    %24 = vector.extract_strided_slice %21 {offsets = [8, 0], sizes = [8, 32], strides = [1, 1]} : vector<32x32xf32> to vector<8x32xf32>
    %25 = arith.addf %23, %24 : vector<8x32xf32>
    %26 = vector.extract_strided_slice %21 {offsets = [16, 0], sizes = [8, 32], strides = [1, 1]} : vector<32x32xf32> to vector<8x32xf32>
    %27 = arith.addf %25, %26 : vector<8x32xf32>
    %28 = vector.extract_strided_slice %21 {offsets = [24, 0], sizes = [8, 32], strides = [1, 1]} : vector<32x32xf32> to vector<8x32xf32>
    %29 = arith.addf %27, %28 : vector<8x32xf32>
    %30 = arith.addf %22, %29 : vector<8x32xf32>
    %c0_7 = arith.constant 0 : index
    %c0_8 = arith.constant 0 : index
    %31 = vector.load %arg5[%c0_7, %c0_8] : memref<8x32xf32, #tpu.memory_space<vmem>>, vector<8x32xf32>
    tpu.vector_store %arg5[%c0_7, %c0_8], %30 {strides = array<i32>} : memref<8x32xf32, #tpu.memory_space<vmem>>, vector<8x32xf32>,
    %c0_9 = arith.constant 0 : index
    %c0_10 = arith.constant 0 : index
    %32 = vector.load %arg6[%c0_9, %c0_10] : memref<8x32xf32, #tpu.memory_space<vmem>>, vector<8x32xf32>
    %33 = vector.extract_strided_slice %16 {offsets = [0, 0], sizes = [8, 32], strides = [1, 1]} : vector<32x32xf32> to vector<8x32xf32>
    %34 = vector.extract_strided_slice %16 {offsets = [8, 0], sizes = [8, 32], strides = [1, 1]} : vector<32x32xf32> to vector<8x32xf32>
    %35 = arith.addf %33, %34 : vector<8x32xf32>
    %36 = vector.extract_strided_slice %16 {offsets = [16, 0], sizes = [8, 32], strides = [1, 1]} : vector<32x32xf32> to vector<8x32xf32>
    %37 = arith.addf %35, %36 : vector<8x32xf32>
    %38 = vector.extract_strided_slice %16 {offsets = [24, 0], sizes = [8, 32], strides = [1, 1]} : vector<32x32xf32> to vector<8x32xf32>
    %39 = arith.addf %37, %38 : vector<8x32xf32>
    %40 = arith.addf %32, %39 : vector<8x32xf32>
    %c0_11 = arith.constant 0 : index
    %c0_12 = arith.constant 0 : index
    %41 = vector.load %arg6[%c0_11, %c0_12] : memref<8x32xf32, #tpu.memory_space<vmem>>, vector<8x32xf32>
    tpu.vector_store %arg6[%c0_11, %c0_12], %40 {strides = array<i32>} : memref<8x32xf32, #tpu.memory_space<vmem>>, vector<8x32xf32>,
    %c0_13 = arith.constant 0 : index
    %c0_14 = arith.constant 0 : index
    %42 = vector.load %arg7[%c0_13, %c0_14] : memref<8x32xf32, #tpu.memory_space<vmem>>, vector<8x32xf32>
    %43 = vector.extract_strided_slice %20 {offsets = [0, 0], sizes = [8, 32], strides = [1, 1]} : vector<32x32xf32> to vector<8x32xf32>
    %44 = vector.extract_strided_slice %20 {offsets = [8, 0], sizes = [8, 32], strides = [1, 1]} : vector<32x32xf32> to vector<8x32xf32>
    %45 = arith.addf %43, %44 : vector<8x32xf32>
    %46 = vector.extract_strided_slice %20 {offsets = [16, 0], sizes = [8, 32], strides = [1, 1]} : vector<32x32xf32> to vector<8x32xf32>
    %47 = arith.addf %45, %46 : vector<8x32xf32>
    %48 = vector.extract_strided_slice %20 {offsets = [24, 0], sizes = [8, 32], strides = [1, 1]} : vector<32x32xf32> to vector<8x32xf32>
    %49 = arith.addf %47, %48 : vector<8x32xf32>
    %50 = arith.addf %42, %49 : vector<8x32xf32>
    %c0_15 = arith.constant 0 : index
    %c0_16 = arith.constant 0 : index
    %51 = vector.load %arg7[%c0_15, %c0_16] : memref<8x32xf32, #tpu.memory_space<vmem>>, vector<8x32xf32>
    tpu.vector_store %arg7[%c0_15, %c0_16], %50 {strides = array<i32>} : memref<8x32xf32, #tpu.memory_space<vmem>>, vector<8x32xf32>,
    %cst_17 = arith.constant 0.000000e+00 : f32
    %52 = vector.broadcast %cst_17 : f32 to vector<32x32xf32>
    %53 = arith.cmpf one, %16, %52 : vector<32x32xf32>
    %54 = arith.extui %53 : vector<32x32xi1> to vector<32x32xi32>
    %55 = arith.sitofp %54 : vector<32x32xi32> to vector<32x32xf32>
    %cst_18 = arith.constant 0.000000e+00 : f32
    %56 = vector.broadcast %cst_18 : f32 to vector<32x32xf32>
    %57 = arith.cmpf one, %20, %56 : vector<32x32xf32>
    %58 = arith.extui %57 : vector<32x32xi1> to vector<32x32xi32>
    %59 = arith.sitofp %58 : vector<32x32xi32> to vector<32x32xf32>
    %60 = arith.mulf %55, %59 : vector<32x32xf32>
    %cst_19 = arith.constant dense<0.000000e+00> : vector<32xf32>
    %61 = vector.multi_reduction <add>, %60, %cst_19 [1] : vector<32x32xf32> to vector<32xf32>
    %62 = vector.shape_cast %61 : vector<32xf32> to vector<32x1xf32>
    %63 = arith.addf %55, %59 : vector<32x32xf32>
    %cst_20 = arith.constant dense<0.000000e+00> : vector<32xf32>
    %64 = vector.multi_reduction <add>, %63, %cst_20 [1] : vector<32x32xf32> to vector<32xf32>
    %65 = vector.shape_cast %64 : vector<32xf32> to vector<32x1xf32>
    %66 = arith.subf %65, %62 : vector<32x1xf32>
    %67 = tpu.reciprocal %66 : vector<32x1xf32> -> vector<32x1xf32>
    %68 = arith.mulf %62, %67 : vector<32x1xf32>
    %cst_21 = arith.constant 0.000000e+00 : f32
    %69 = vector.broadcast %cst_21 : f32 to vector<32x1xf32>
    %70 = arith.select %12, %68, %69 : vector<32x1xi1>, vector<32x1xf32>
    %c0_22 = arith.constant 0 : index
    %c0_23 = arith.constant 0 : index
    %71 = vector.load %arg8[%c0_22, %c0_23] : memref<8x1xf32, #tpu.memory_space<vmem>>, vector<8x1xf32>
    %72 = vector.extract_strided_slice %70 {offsets = [0, 0], sizes = [8, 1], strides = [1, 1]} : vector<32x1xf32> to vector<8x1xf32>
    %73 = vector.extract_strided_slice %70 {offsets = [8, 0], sizes = [8, 1], strides = [1, 1]} : vector<32x1xf32> to vector<8x1xf32>
    %74 = arith.addf %72, %73 : vector<8x1xf32>
    %75 = vector.extract_strided_slice %70 {offsets = [16, 0], sizes = [8, 1], strides = [1, 1]} : vector<32x1xf32> to vector<8x1xf32>
    %76 = arith.addf %74, %75 : vector<8x1xf32>
    %77 = vector.extract_strided_slice %70 {offsets = [24, 0], sizes = [8, 1], strides = [1, 1]} : vector<32x1xf32> to vector<8x1xf32>
    %78 = arith.addf %76, %77 : vector<8x1xf32>
    %79 = arith.addf %71, %78 : vector<8x1xf32>
    %c0_24 = arith.constant 0 : index
    %c0_25 = arith.constant 0 : index
    %80 = vector.load %arg8[%c0_24, %c0_25] : memref<8x1xf32, #tpu.memory_space<vmem>>, vector<8x1xf32>
    tpu.vector_store %arg8[%c0_24, %c0_25], %79 {strides = array<i32>} : memref<8x1xf32, #tpu.memory_space<vmem>>, vector<8x1xf32>,
    %c0_i32_26 = arith.constant 0 : i32
    %81 = arith.cmpi eq, %arg1, %c0_i32_26 : i32
    %82 = arith.extui %81 : i1 to i32
    %c0_i32_27 = arith.constant 0 : i32
    %83 = arith.cmpi ne, %82, %c0_i32_27 : i32
    scf.if %83 {
      %cst_28 = arith.constant 0.000000e+00 : f32
      %84 = vector.broadcast %cst_28 : f32 to vector<8x32xf32>
      %c0_29 = arith.constant 0 : index
      %c0_30 = arith.constant 0 : index
      %c0_31 = arith.constant 0 : index
      %85 = vector.load %arg4[%c0_29, %c0_30, %c0_31] : memref<1x8x32xf32, #tpu.memory_space<vmem>>, vector<1x8x32xf32>
      %86 = vector.shape_cast %85 : vector<1x8x32xf32> to vector<8x32xf32>
      %87 = vector.shape_cast %84 : vector<8x32xf32> to vector<1x8x32xf32>
      tpu.vector_store %arg4[%c0_29, %c0_30, %c0_31], %87 {strides = array<i32>} : memref<1x8x32xf32, #tpu.memory_space<vmem>>, vector<1x8x32xf32>,
      %c0_32 = arith.constant 0 : index
      %c0_33 = arith.constant 0 : index
      %88 = vector.load %arg5[%c0_32, %c0_33] : memref<8x32xf32, #tpu.memory_space<vmem>>, vector<8x32xf32>
      %cst_34 = arith.constant dense<0.000000e+00> : vector<32xf32>
      %89 = vector.multi_reduction <add>, %88, %cst_34 [0] : vector<8x32xf32> to vector<32xf32>
      %c0_35 = arith.constant 0 : index
      %c0_36 = arith.constant 0 : index
      %c0_37 = arith.constant 0 : index
      %90 = vector.load %arg4[%c0_35, %c0_36, %c0_37] : memref<1x8x32xf32, #tpu.memory_space<vmem>>, vector<1x1x32xf32>
      %91 = vector.shape_cast %90 : vector<1x1x32xf32> to vector<32xf32>
      %92 = vector.shape_cast %89 : vector<32xf32> to vector<1x1x32xf32>
      tpu.vector_store %arg4[%c0_35, %c0_36, %c0_37], %92 {strides = array<i32>} : memref<1x8x32xf32, #tpu.memory_space<vmem>>, vector<1x1x32xf32>,
      %c0_38 = arith.constant 0 : index
      %c0_39 = arith.constant 0 : index
      %93 = vector.load %arg6[%c0_38, %c0_39] : memref<8x32xf32, #tpu.memory_space<vmem>>, vector<8x32xf32>
      %cst_40 = arith.constant dense<0.000000e+00> : vector<32xf32>
      %94 = vector.multi_reduction <add>, %93, %cst_40 [0] : vector<8x32xf32> to vector<32xf32>
      %c0_41 = arith.constant 0 : index
      %c1 = arith.constant 1 : index
      %c0_42 = arith.constant 0 : index
      %95 = vector.load %arg4[%c0_41, %c1, %c0_42] : memref<1x8x32xf32, #tpu.memory_space<vmem>>, vector<1x1x32xf32>
      %96 = vector.shape_cast %95 : vector<1x1x32xf32> to vector<32xf32>
      %97 = vector.shape_cast %94 : vector<32xf32> to vector<1x1x32xf32>
      tpu.vector_store %arg4[%c0_41, %c1, %c0_42], %97 {strides = array<i32>} : memref<1x8x32xf32, #tpu.memory_space<vmem>>, vector<1x1x32xf32>,
      %c0_43 = arith.constant 0 : index
      %c0_44 = arith.constant 0 : index
      %98 = vector.load %arg7[%c0_43, %c0_44] : memref<8x32xf32, #tpu.memory_space<vmem>>, vector<8x32xf32>
      %cst_45 = arith.constant dense<0.000000e+00> : vector<32xf32>
      %99 = vector.multi_reduction <add>, %98, %cst_45 [0] : vector<8x32xf32> to vector<32xf32>
      %c0_46 = arith.constant 0 : index
      %c2 = arith.constant 2 : index
      %c0_47 = arith.constant 0 : index
      %100 = vector.load %arg4[%c0_46, %c2, %c0_47] : memref<1x8x32xf32, #tpu.memory_space<vmem>>, vector<1x1x32xf32>
      %101 = vector.shape_cast %100 : vector<1x1x32xf32> to vector<32xf32>
      %102 = vector.shape_cast %99 : vector<32xf32> to vector<1x1x32xf32>
      tpu.vector_store %arg4[%c0_46, %c2, %c0_47], %102 {strides = array<i32>} : memref<1x8x32xf32, #tpu.memory_space<vmem>>, vector<1x1x32xf32>,
      %cst_48 = arith.constant 0.000000e+00 : f32
      %103 = vector.broadcast %cst_48 : f32 to vector<32xf32>
      %c0_49 = arith.constant 0 : index
      %c0_50 = arith.constant 0 : index
      %104 = vector.load %arg8[%c0_49, %c0_50] : memref<8x1xf32, #tpu.memory_space<vmem>>, vector<8x1xf32>
      %105 = vector.shape_cast %104 : vector<8x1xf32> to vector<1x8x1xf32>
      %cst_51 = arith.constant dense<0.000000e+00> : vector<1xf32>
      %106 = vector.multi_reduction <add>, %105, %cst_51 [1, 2] : vector<1x8x1xf32> to vector<1xf32>
      %107 = vector.shape_cast %106 : vector<1xf32> to vector<1x1x1xf32>
      %108 = vector.extract %107[0, 0, 0] : f32 from vector<1x1x1xf32>
      %109 = vector.broadcast %108 : f32 to vector<32xf32>
      %110 = arith.addf %103, %109 : vector<32xf32>
      %c0_52 = arith.constant 0 : index
      %c3 = arith.constant 3 : index
      %c0_53 = arith.constant 0 : index
      %111 = vector.load %arg4[%c0_52, %c3, %c0_53] : memref<1x8x32xf32, #tpu.memory_space<vmem>>, vector<1x1x32xf32>
      %112 = vector.shape_cast %111 : vector<1x1x32xf32> to vector<32xf32>
      %113 = vector.shape_cast %110 : vector<32xf32> to vector<1x1x32xf32>
      tpu.vector_store %arg4[%c0_52, %c3, %c0_53], %113 {strides = array<i32>} : memref<1x8x32xf32, #tpu.memory_space<vmem>>, vector<1x1x32xf32>,
    } else {
    }
    return
  }
  func.func @transform_0(%arg0: i32, %arg1: i32) -> (i32, i32) {
    %c1_i32 = arith.constant 1 : i32
    %0 = arith.muli %arg0, %c1_i32 : i32
    %1 = arith.addi %0, %arg1 : i32
    %c0_i32 = arith.constant 0 : i32
    %c0_i32_0 = arith.constant 0 : i32
    return %1, %c0_i32 : i32, i32
  }
  func.func @transform_1(%arg0: i32, %arg1: i32) -> (i32, i32) {
    %c1_i32 = arith.constant 1 : i32
    %0 = arith.muli %arg0, %c1_i32 : i32
    %1 = arith.addi %0, %arg1 : i32
    %c0_i32 = arith.constant 0 : i32
    %c0_i32_0 = arith.constant 0 : i32
    return %1, %c0_i32 : i32, i32
  }
  func.func @transform_2(%arg0: i32, %arg1: i32) -> (i32, i32, i32) {
    %c0_i32 = arith.constant 0 : i32
    %c0_i32_0 = arith.constant 0 : i32
    %c0_i32_1 = arith.constant 0 : i32
    return %arg0, %c0_i32, %c0_i32_0 : i32, i32, i32
  }
}

</mosaic_0001>

<bundles_post_ra>
// kernel: multilabel_metrics_update.1
= control target key start
LH: loop header
LB: loop body
LE: loop exit
PB: predicated region body
PF: predicated region fallthrough
CT: control target
= control target key end

     0   :  { %7 = vsyncpa [#allocation7], 0  ;;  %s379_s0 = inlined_call_operand.hbm [shape: f32[8,32], index: 0, kind: input, shape index: {}]   ;;  %s380_s1 = inlined_call_operand.hbm [shape: f32[8,32], index: 1, kind: input, shape index: {}]   ;;  %s381_s2 = inlined_call_operand.vmem [shape: f32[1,8,32], index: 2, kind: output, shape index: {}]  }
   0x1   :  { %8 = vsyncpa [#allocation9], 0 }
   0x2   :  { %17 = vsyncadd [#allocation7], 384  ;;  %s322_s9 = smov [#allocation6]  }
   0x3   :  { %s22_s10 = sshll.u32 %s322_s9, 4  ;;  %s23_s10 = int_to_ptr.vmem [resolvable:$true] %s22_s10 }
   0x4   :  { %s286_s11 = scalar_lea.vmem %s23_s10, 128  ;;  %s290_s12 = scalar_lea.vmem %s23_s10, 512 }
   0x5   :  { %p287_p0 = scmp.ne.s32.totalorder %s23_s10, %s286_s11  ;;  %p291_p1 = scmp.lt.s32.totalorder %s23_s10, %s23_s10 }
   0x6   :  { %p292_p2 = scmp.lt.s32.totalorder %s290_s12, %s286_s11 }
   0x8   :  { %p293_p3 = por %p292_p2, %p291_p1 }
   0xa   :  { %p294_p4 = pnand %p293_p3, %p287_p0 }
   0xc   :  { %297 = shalt.err (!%p294_p4)
}
   0xd   :  { %s323_s13 = smov 128   ;;  %s324_s14 = smov 8  }
   0xe   :  { %28 = dma.hbm_to_vmem [thread:$0]  %s379_s0, 128, %s23_s10, [#allocation7], %s323_s13, %s323_s13, %s324_s14  }
   0xf   :  { %37 = vsyncadd [#allocation9], 384  ;;  %s325_s17 = smov [#allocation8]  }
  0x10   :  { %s42_s18 = sshll.u32 %s325_s17, 4  ;;  %s43_s18 = int_to_ptr.vmem [resolvable:$true] %s42_s18 }
  0x11   :  { %s306_s19 = scalar_lea.vmem %s43_s18, 128  ;;  %s310_s20 = scalar_lea.vmem %s43_s18, 512 }
  0x12   :  { %p307_p5 = scmp.ne.s32.totalorder %s43_s18, %s306_s19  ;;  %p311_p6 = scmp.lt.s32.totalorder %s43_s18, %s43_s18 }
  0x13   :  { %p312_p7 = scmp.lt.s32.totalorder %s310_s20, %s306_s19 }
  0x15   :  { %p313_p8 = por %p312_p7, %p311_p6 }
  0x17   :  { %p314_p9 = pnand %p313_p8, %p307_p5 }
  0x19   :  { %317 = shalt.err (!%p314_p9)
}
  0x1a   :  { %48 = dma.hbm_to_vmem [thread:$0]  %s380_s1, 128, %s43_s18, [#allocation9], %s323_s13, %s323_s13, %s324_s14  }
  0x1b   :  { %318 = dma.done.wait [#allocation7], 512  }
  0x1c   :  { %319 = vsyncadd [#allocation7], 4294966784 }
  0x1d   :  { %320 = dma.done.wait [#allocation9], 512  }
  0x1e   :  { %321 = vsyncadd [#allocation9], 4294966784  ;;  %vm67_vm0 = vcmask 261120   ;;  %v326_v0 = vmov 0.0   ;;  %v73_v1 = vld [vmem:[#allocation6] sm:$0xff]  ;;  %vm71_vm3 = vcmask 7168  }
  0x1f   :  { %68 = vst.msk [vmem:[#allocation2] sm:$0xff] %vm67_vm0, %v326_v0  ;;  %69 = vst.msk [vmem:[#allocation3] sm:$0xff] %vm67_vm0, %v326_v0  ;;  %v77_v2 = vld [vmem:[#allocation8] sm:$0xff]  ;;  %vm136_vm1 = vcmp.ne.f32.partialorder %v73_v1, 0.0  ;;  %vm227_vm4 = vcmask 253952  }
  0x20   :  { %70 = vst.msk [vmem:[#allocation4] sm:$0xff] %vm67_vm0, %v326_v0  ;;  %218 = vst.msk [vmem:[%s381_s2] sm:$0xff] %vm67_vm0, %v326_v0  ;;  %vm148_vm2 = vcmp.ne.f32.partialorder %v77_v2, 0.0  ;;  %v113_v3 = vmul.f32 %v77_v2, %v73_v1  ;;  %v267_v7 = vsel %vm136_vm1, 1.0, %v326_v0 }
  0x21   :  { %v268_v8 = vsel %vm148_vm2, 1.0, %v326_v0  ;;  %72 = vst.msk [vmem:[#allocation5] sm:$0xff] %vm71_vm3, %v326_v0 }
  0x22   :  { %v160_v11 = vmul.f32 %v268_v8, %v267_v7  ;;  %v176_v13 = vadd.f32 %v268_v8, %v267_v7 }
  0x24   :  { %v164_v14 = vsel %vm67_vm0, %v160_v11, 0.0  ;;  %v180_v15 = vsel %vm67_vm0, %v176_v13, 0.0 }
  0x25   :  { %165 = vadd.xlane.f32.xlu0 %v164_v14 }
  0x26   :  { %v117_v4 = vld [vmem:[#allocation2] sm:$0xff]  ;;  %v124_v5 = vld [vmem:[#allocation3] sm:$0xff] }
  0x27   :  { %v130_v6 = vld [vmem:[#allocation4] sm:$0xff]  ;;  %v128_v9 = vadd.f32 %v124_v5, %v73_v1  ;;  %v121_v12 = vadd.f32 %v117_v4, %v113_v3 }
  0x28   :  { %v134_v10 = vadd.f32 %v130_v6, %v77_v2  ;;  %v208_v20 = vld [vmem:[#allocation5] sm:$0xff] }
  0x29   :  { %129 = vst.msk [vmem:[#allocation3] sm:$0xff] %vm67_vm0, %v128_v9  ;;  %123 = vst.msk [vmem:[#allocation2] sm:$0xff] %vm67_vm0, %v121_v12  ;;  %181 = vadd.xlane.f32.xlu0 %v180_v15 }
  0x2a   :  { %135 = vst.msk [vmem:[#allocation4] sm:$0xff] %vm67_vm0, %v134_v10 }
  0x30   :  { %v219_v25 = vld [vmem:[#allocation2] sm:$0xff]  ;;  %v229_v26 = vld [vmem:[#allocation3] sm:$0xff] }
  0x31   :  { %v238_v27 = vld [vmem:[#allocation4] sm:$0xff]  ;;  %v220_v28 = vsel %vm67_vm0, %v219_v25, 0.0  ;;  %v230_v29 = vsel %vm67_vm0, %v229_v26, 0.0 }
  0x32   :  { %v239_v30 = vsel %vm67_vm0, %v238_v27, 0.0  ;;  %v221_v31 = vrot.slane %v220_v28, 4  ;;  %v231_v32 = vrot.slane %v230_v29, 4 }
  0x33   :  { %v240_v33 = vrot.slane %v239_v30, 4 }
  0x34   :  { %v222_v34 = vadd.f32 %v221_v31, %v220_v28  ;;  %v232_v35 = vadd.f32 %v231_v32, %v230_v29 }
  0x35   :  { %v241_v36 = vadd.f32 %v240_v33, %v239_v30 }
  0x36   :  { %v223_v37 = vrot.slane %v222_v34, 2  ;;  %v233_v38 = vrot.slane %v232_v35, 2 }
  0x37   :  { %v242_v39 = vrot.slane %v241_v36, 2 }
  0x38   :  { %v224_v40 = vadd.f32 %v223_v37, %v222_v34  ;;  %v234_v41 = vadd.f32 %v233_v38, %v232_v35 }
  0x39   :  { %v243_v42 = vadd.f32 %v242_v39, %v241_v36 }
  0x3a   :  { %v225_v43 = vrot.slane %v224_v40, 1  ;;  %v235_v44 = vrot.slane %v234_v41, 1 }
  0x3b   :  { %v244_v45 = vrot.slane %v243_v42, 1 }
  0x3c   :  { %v226_v46 = vadd.f32 %v225_v43, %v224_v40  ;;  %v236_v47 = vadd.f32 %v235_v44, %v234_v41 }
  0x3d   :  { %v245_v48 = vadd.f32 %v244_v45, %v243_v42 }
  0x3e   :  { %228 = vst.msk [vmem:[%s381_s2] sm:$0x1] %vm227_vm4, %v226_v46  ;;  %237 = vst.msk [vmem:[%s381_s2 + $0x1] sm:$0x1] %vm227_vm4, %v236_v47 }
  0x3f   :  { %246 = vst.msk [vmem:[%s381_s2 + $0x2] sm:$0x1] %vm227_vm4, %v245_v48 }
  0xae   :  { %v166_v16 = vpop.xlane.xlu0 %165 }
  0xb2   :  { %v182_v17 = vpop.xlane.xlu0 %181 }
  0xb3   :  { %v192_v18 = vsub.f32 %v182_v17, %v166_v16 }
  0xb5   :  { %276 = vrcp.f32 %v192_v18 }
  0xc2   :  { %v277_v19 = vpop.eup %276 }
  0xc3   :  { %v200_v21 = vmul.f32 %v277_v19, %v166_v16 }
  0xc5   :  { %v212_v22 = vadd.f32 %v208_v20, %v200_v21 }
  0xc7   :  { %214 = vst.msk [vmem:[#allocation5] sm:$0xff] %vm71_vm3, %v212_v22 }
  0xce   :  { %v247_v23 = vld [vmem:[#allocation5] sm:$0xff] }
  0xcf   :  { %v248_v24 = vsel %vm71_vm3, %v247_v23, 0.0 }
  0xd0   :  { %249 = vadd.xlane.f32.xlu1 %v248_v24 }
 0x159   :  { %v250_v49 = vpop.xlane.xlu1 %249 }
 0x15a   :  { %v251_v50 = vrot.slane %v250_v49, 4 }
 0x15c   :  { %v252_v51 = vadd.f32 %v251_v50, %v250_v49 }
 0x15e   :  { %v253_v52 = vrot.slane %v252_v51, 2 }
 0x160   :  { %v254_v53 = vadd.f32 %v253_v52, %v252_v51 }
 0x162   :  { %v255_v54 = vrot.slane %v254_v53, 1 }
 0x164   :  { %v256_v55 = vadd.f32 %v255_v54, %v254_v53 }
 0x166   :  { %269 = vpush %v256_v55 }
 0x197   :  { %s270_s29 = spop %269 }
 0x198   :  { %v258_v56 = vstv %s270_s29 }
 0x199   :  { %260 = vst.msk [vmem:[%s381_s2 + $0x3] sm:$0x1] %vm227_vm4, %v258_v56 }
 0x19a   :  { %265 = vsyncpa [#allocation7], 1 }
 0x19b   :  { %266 = vsyncpa [#allocation9], 1 }

</bundles_post_ra>
